<compile_context>
chip_gen: v7x
topology: tpu7x:2x2x1
jax: 0.10.0
libtpu: 0.0.40
codegen_flags: <defaults>
</compile_context>

<pallas_src>
import functools

import jax
import jax.numpy as jnp
from jax.experimental import pallas as pl
from jax.experimental.pallas import tpu as pltpu

BN_EPS = 1e-5
LANE = 128


def mlp_kernel(x_ref, w1_ref, gamma_ref, beta_ref, w2_ref, o_ref, acc_ref):
    # Grid = (D_out tiles [parallel], H tiles [arbitrary/reduction, last]).
    k = pl.program_id(1)

    @pl.when(k == 0)
    def _():
        acc_ref[...] = jnp.zeros_like(acc_ref)

    # ---- Linear 1 for this H tile: bf16 operands, f32 MXU accumulation ----
    h = jnp.dot(
        x_ref[...].astype(jnp.bfloat16),
        w1_ref[...].astype(jnp.bfloat16),
        preferred_element_type=jnp.float32,
    )  # [N, TH] f32

    # ---- BatchNorm1d (training-mode batch stats), f32 math ----
    # N is whole inside the block, so per-column stats over axis 0 are exact.
    n = h.shape[0]
    inv_n = jnp.float32(1.0 / n)
    mean = jnp.sum(h, axis=0, keepdims=True) * inv_n          # [1, TH]
    centered = h - mean
    var = jnp.sum(centered * centered, axis=0, keepdims=True) * inv_n  # biased
    inv_std = jax.lax.rsqrt(var + BN_EPS)
    h_bn = centered * inv_std * gamma_ref[...] + beta_ref[...]

    # ---- ReLU ----
    h_act = jnp.maximum(h_bn, jnp.float32(0.0))

    # ---- Linear 2: partial contraction over this H tile -> accumulate ----
    acc_ref[...] += jnp.dot(
        h_act.astype(jnp.bfloat16),
        w2_ref[...].astype(jnp.bfloat16),
        preferred_element_type=jnp.float32,
    )

    @pl.when(k == pl.num_programs(1) - 1)
    def _():
        o_ref[...] = acc_ref[...].astype(o_ref.dtype)


def _pad_axis(a, axis, multiple):
    pad = (-a.shape[axis]) % multiple
    if pad == 0:
        return a
    widths = [(0, 0)] * a.ndim
    widths[axis] = (0, pad)
    return jnp.pad(a, widths)


@functools.partial(jax.jit, static_argnames=("th", "td"))
def mlp_forward(x, w1_t, gamma, beta, w2_t, *, th=128, td=128):
    """x: [N, D_in]; w1_t: [D_in, H]; gamma/beta: [1, H]; w2_t: [H, D_out]."""
    N, _ = x.shape
    D_out = w2_t.shape[1]

    # Zero-pad all feature dims to lane-dense (multiples of 128 / tile size).
    x_p = _pad_axis(x, 1, LANE)
    w1_p = _pad_axis(_pad_axis(w1_t, 0, LANE), 1, th)
    g_p = _pad_axis(gamma, 1, th)
    b_p = _pad_axis(beta, 1, th)
    w2_p = _pad_axis(_pad_axis(w2_t, 0, th), 1, td)

    D_in_p = x_p.shape[1]
    H_p = w1_p.shape[1]
    D_out_p = w2_p.shape[1]

    grid = (D_out_p // td, H_p // th)
    # NOTE: linear1+BN+ReLU for an H tile is recomputed per D_out tile; at the
    # target sizes there is a single D_out tile so there is no recompute.

    out_p = pl.pallas_call(
        mlp_kernel,
        out_shape=jax.ShapeDtypeStruct((N, D_out_p), jnp.float32),
        grid_spec=pltpu.PrefetchScalarGridSpec(
            num_scalar_prefetch=0,
            grid=grid,
            in_specs=[
                pl.BlockSpec((N, D_in_p), lambda j, k: (0, 0)),   # x (whole batch)
                pl.BlockSpec((D_in_p, th), lambda j, k: (0, k)),  # w1 tile
                pl.BlockSpec((1, th), lambda j, k: (0, k)),       # gamma tile
                pl.BlockSpec((1, th), lambda j, k: (0, k)),       # beta tile
                pl.BlockSpec((th, td), lambda j, k: (k, j)),      # w2 tile
            ],
            out_specs=pl.BlockSpec((N, td), lambda j, k: (0, j)),
            scratch_shapes=[pltpu.VMEM((N, td), jnp.float32)],
        ),
        compiler_params=pltpu.CompilerParams(
            dimension_semantics=("parallel", "arbitrary"),
            vmem_limit_bytes=64 * 1024 * 1024,
        ),
    )(x_p, w1_p, g_p, b_p, w2_p)

    return out_p[:, :D_out]


def init_params(key, input_dim, hidden_dim, output_dim):
    """Deterministic init mimicking PyTorch Linear default (uniform +-1/sqrt(fan_in))."""
    k1, k2 = jax.random.split(key)
    bound1 = 1.0 / (input_dim ** 0.5)
    bound2 = 1.0 / (hidden_dim ** 0.5)
    # Stored already transposed: [in, out]
    w1_t = jax.random.uniform(k1, (input_dim, hidden_dim), jnp.float32,
                              minval=-bound1, maxval=bound1)
    w2_t = jax.random.uniform(k2, (hidden_dim, output_dim), jnp.float32,
                              minval=-bound2, maxval=bound2)
    gamma = jnp.ones((1, hidden_dim), jnp.float32)   # BatchNorm1d weight
    beta = jnp.zeros((1, hidden_dim), jnp.float32)   # BatchNorm1d bias
    return w1_t, gamma, beta, w2_t


def reference_forward_f32(x, w1_t, gamma, beta, w2_t):
    """Pure-f32 JAX reference (module semantics)."""
    h = x @ w1_t
    mean = jnp.mean(h, axis=0, keepdims=True)
    var = jnp.mean((h - mean) ** 2, axis=0, keepdims=True)
    h = (h - mean) / jnp.sqrt(var + BN_EPS) * gamma + beta
    h = jnp.maximum(h, 0.0)
    return h @ w2_t


def reference_forward_matched(x, w1_t, gamma, beta, w2_t):
    """Reference with the same bf16-operand / f32-accumulate numerics as the kernel."""
    h = jnp.dot(x.astype(jnp.bfloat16), w1_t.astype(jnp.bfloat16),
                preferred_element_type=jnp.float32)
    mean = jnp.mean(h, axis=0, keepdims=True)
    var = jnp.mean((h - mean) ** 2, axis=0, keepdims=True)
    h = (h - mean) * jax.lax.rsqrt(var + BN_EPS) * gamma + beta
    h = jnp.maximum(h, 0.0)
    return jnp.dot(h.astype(jnp.bfloat16), w2_t.astype(jnp.bfloat16),
                   preferred_element_type=jnp.float32)


if __name__ == "__main__":
    key = jax.random.PRNGKey(0)
    kx, kp = jax.random.split(key)

    N, INPUT_DIM, HIDDEN_DIM, OUTPUT_DIM = 8, 16, 32, 16
    x = jax.random.normal(kx, (N, INPUT_DIM), jnp.float32)
    w1_t, gamma, beta, w2_t = init_params(kp, INPUT_DIM, HIDDEN_DIM, OUTPUT_DIM)

    out = mlp_forward(x, w1_t, gamma, beta, w2_t)
    out = jax.block_until_ready(out)
    assert out.shape == (N, OUTPUT_DIM)

    # Tight check against a reference with matching bf16/f32 numerics.
    ref_m = reference_forward_matched(x, w1_t, gamma, beta, w2_t)
    assert jnp.allclose(out, ref_m, atol=1e-3, rtol=1e-3), "mismatch vs matched reference"

    # Looser check against the pure-f32 module semantics (bf16 matmul rounding).
    ref_f32 = reference_forward_f32(x, w1_t, gamma, beta, w2_t)
    assert jnp.allclose(out, ref_f32, atol=5e-2, rtol=5e-2), "mismatch vs f32 reference"

    print("KERNEL_OK")
</pallas_src>

<mosaic_0001>
module attributes {stable_mosaic.version = 11 : i64} {
  func.func @mlp_kernel(%arg0: i32, %arg1: i32, %arg2: memref<8x128xf32, #tpu.memory_space<vmem>>, %arg3: memref<128x128xf32, #tpu.memory_space<vmem>>, %arg4: memref<1x128xf32, #tpu.memory_space<vmem>>, %arg5: memref<1x128xf32, #tpu.memory_space<vmem>>, %arg6: memref<128x128xf32, #tpu.memory_space<vmem>>, %arg7: memref<8x128xf32, #tpu.memory_space<vmem>>, %arg8: memref<8x128xf32, #tpu.memory_space<vmem>>) attributes {dimension_semantics = [#tpu.dimension_semantics<parallel>, #tpu.dimension_semantics<arbitrary>], iteration_bounds = array<i64: 1, 1>, scalar_prefetch = 0 : i64, scratch_operands = 1 : i64, tpu.core_type = #tpu.core_type<tc>, window_params = [{pipeline_mode = #tpu.pipeline_mode<synchronous>, transform_indices = @transform_0, window_bounds = array<i64: 8, 128>}, {transform_indices = @transform_1, window_bounds = array<i64: 128, 128>}, {transform_indices = @transform_2, window_bounds = array<i64: 1, 128>}, {transform_indices = @transform_3, window_bounds = array<i64: 1, 128>}, {transform_indices = @transform_4, window_bounds = array<i64: 128, 128>}, {transform_indices = @transform_5, window_bounds = array<i64: 8, 128>}]} {
    %c0_i32 = arith.constant 0 : i32
    %0 = arith.cmpi eq, %arg1, %c0_i32 : i32
    %1 = arith.extui %0 : i1 to i32
    %c0_i32_0 = arith.constant 0 : i32
    %2 = arith.cmpi ne, %1, %c0_i32_0 : i32
    scf.if %2 {
      %cst_23 = arith.constant 0.000000e+00 : f32
      %42 = vector.broadcast %cst_23 : f32 to vector<8x128xf32>
      %c0_24 = arith.constant 0 : index
      %c0_25 = arith.constant 0 : index
      %43 = vector.load %arg8[%c0_24, %c0_25] : memref<8x128xf32, #tpu.memory_space<vmem>>, vector<8x128xf32>
      tpu.vector_store %arg8[%c0_24, %c0_25], %42 {strides = array<i32>} : memref<8x128xf32, #tpu.memory_space<vmem>>, vector<8x128xf32>,
    } else {
    }
    %c0 = arith.constant 0 : index
    %c0_1 = arith.constant 0 : index
    %3 = vector.load %arg2[%c0, %c0_1] : memref<8x128xf32, #tpu.memory_space<vmem>>, vector<8x128xf32>
    %4 = arith.truncf %3 : vector<8x128xf32> to vector<8x128xbf16>
    %c0_2 = arith.constant 0 : index
    %c0_3 = arith.constant 0 : index
    %5 = vector.load %arg3[%c0_2, %c0_3] : memref<128x128xf32, #tpu.memory_space<vmem>>, vector<128x128xf32>
    %6 = arith.truncf %5 : vector<128x128xf32> to vector<128x128xbf16>
    %cst = arith.constant dense<0.000000e+00> : vector<8x128xf32>
    %7 = tpu.matmul %4, %6, %cst {dimension_numbers = #tpu.dot_dimension_numbers<[1], [0], [0], [1], [0, 0, 1, 1], [], []>} : vector<8x128xbf16>, vector<128x128xbf16>, vector<8x128xf32> -> vector<8x128xf32>
    %cst_4 = arith.constant dense<0.000000e+00> : vector<128xf32>
    %8 = vector.multi_reduction <add>, %7, %cst_4 [0] : vector<8x128xf32> to vector<128xf32>
    %9 = vector.shape_cast %8 : vector<128xf32> to vector<1x128xf32>
    %cst_5 = arith.constant 1.250000e-01 : f32
    %10 = vector.broadcast %cst_5 : f32 to vector<1x128xf32>
    %11 = arith.mulf %9, %10 : vector<1x128xf32>
    %12 = vector.broadcast %11 : vector<1x128xf32> to vector<8x128xf32>
    %13 = arith.subf %7, %12 : vector<8x128xf32>
    %14 = arith.mulf %13, %13 : vector<8x128xf32>
    %cst_6 = arith.constant dense<0.000000e+00> : vector<128xf32>
    %15 = vector.multi_reduction <add>, %14, %cst_6 [0] : vector<8x128xf32> to vector<128xf32>
    %16 = vector.shape_cast %15 : vector<128xf32> to vector<1x128xf32>
    %cst_7 = arith.constant 1.250000e-01 : f32
    %17 = vector.broadcast %cst_7 : f32 to vector<1x128xf32>
    %18 = arith.mulf %16, %17 : vector<1x128xf32>
    %cst_8 = arith.constant 9.99999974E-6 : f32
    %19 = vector.broadcast %cst_8 : f32 to vector<1x128xf32>
    %20 = arith.addf %18, %19 : vector<1x128xf32>
    %21 = math.rsqrt %20 : vector<1x128xf32>
    %22 = vector.broadcast %21 : vector<1x128xf32> to vector<8x128xf32>
    %23 = arith.mulf %13, %22 : vector<8x128xf32>
    %c0_9 = arith.constant 0 : index
    %c0_10 = arith.constant 0 : index
    %24 = vector.load %arg4[%c0_9, %c0_10] : memref<1x128xf32, #tpu.memory_space<vmem>>, vector<1x128xf32>
    %25 = vector.broadcast %24 : vector<1x128xf32> to vector<8x128xf32>
    %26 = arith.mulf %23, %25 : vector<8x128xf32>
    %c0_11 = arith.constant 0 : index
    %c0_12 = arith.constant 0 : index
    %27 = vector.load %arg5[%c0_11, %c0_12] : memref<1x128xf32, #tpu.memory_space<vmem>>, vector<1x128xf32>
    %28 = vector.broadcast %27 : vector<1x128xf32> to vector<8x128xf32>
    %29 = arith.addf %26, %28 : vector<8x128xf32>
    %cst_13 = arith.constant 0.000000e+00 : f32
    %30 = vector.broadcast %cst_13 : f32 to vector<8x128xf32>
    %31 = arith.maximumf %29, %30 : vector<8x128xf32>
    %c0_14 = arith.constant 0 : index
    %c0_15 = arith.constant 0 : index
    %32 = vector.load %arg8[%c0_14, %c0_15] : memref<8x128xf32, #tpu.memory_space<vmem>>, vector<8x128xf32>
    %33 = arith.truncf %31 : vector<8x128xf32> to vector<8x128xbf16>
    %c0_16 = arith.constant 0 : index
    %c0_17 = arith.constant 0 : index
    %34 = vector.load %arg6[%c0_16, %c0_17] : memref<128x128xf32, #tpu.memory_space<vmem>>, vector<128x128xf32>
    %35 = arith.truncf %34 : vector<128x128xf32> to vector<128x128xbf16>
    %cst_18 = arith.constant dense<0.000000e+00> : vector<8x128xf32>
    %36 = tpu.matmul %33, %35, %cst_18 {dimension_numbers = #tpu.dot_dimension_numbers<[1], [0], [0], [1], [0, 0, 1, 1], [], []>} : vector<8x128xbf16>, vector<128x128xbf16>, vector<8x128xf32> -> vector<8x128xf32>
    %37 = arith.addf %32, %36 : vector<8x128xf32>
    %c0_19 = arith.constant 0 : index
    %c0_20 = arith.constant 0 : index
    %38 = vector.load %arg8[%c0_19, %c0_20] : memref<8x128xf32, #tpu.memory_space<vmem>>, vector<8x128xf32>
    tpu.vector_store %arg8[%c0_19, %c0_20], %37 {strides = array<i32>} : memref<8x128xf32, #tpu.memory_space<vmem>>, vector<8x128xf32>,
    %c0_i32_21 = arith.constant 0 : i32
    %39 = arith.cmpi eq, %arg1, %c0_i32_21 : i32
    %40 = arith.extui %39 : i1 to i32
    %c0_i32_22 = arith.constant 0 : i32
    %41 = arith.cmpi ne, %40, %c0_i32_22 : i32
    scf.if %41 {
      %c0_23 = arith.constant 0 : index
      %c0_24 = arith.constant 0 : index
      %42 = vector.load %arg8[%c0_23, %c0_24] : memref<8x128xf32, #tpu.memory_space<vmem>>, vector<8x128xf32>
      %c0_25 = arith.constant 0 : index
      %c0_26 = arith.constant 0 : index
      %43 = vector.load %arg7[%c0_25, %c0_26] : memref<8x128xf32, #tpu.memory_space<vmem>>, vector<8x128xf32>
      tpu.vector_store %arg7[%c0_25, %c0_26], %42 {strides = array<i32>} : memref<8x128xf32, #tpu.memory_space<vmem>>, vector<8x128xf32>,
    } else {
    }
    return
  }
  func.func @transform_0(%arg0: i32, %arg1: i32) -> (i32, i32) {
    %c0_i32 = arith.constant 0 : i32
    %c0_i32_0 = arith.constant 0 : i32
    %c0_i32_1 = arith.constant 0 : i32
    return %c0_i32, %c0_i32_0 : i32, i32
  }
  func.func @transform_1(%arg0: i32, %arg1: i32) -> (i32, i32) {
    %c0_i32 = arith.constant 0 : i32
    %c0_i32_0 = arith.constant 0 : i32
    return %c0_i32, %arg1 : i32, i32
  }
  func.func @transform_2(%arg0: i32, %arg1: i32) -> (i32, i32) {
    %c0_i32 = arith.constant 0 : i32
    %c0_i32_0 = arith.constant 0 : i32
    return %c0_i32, %arg1 : i32, i32
  }
  func.func @transform_3(%arg0: i32, %arg1: i32) -> (i32, i32) {
    %c0_i32 = arith.constant 0 : i32
    %c0_i32_0 = arith.constant 0 : i32
    return %c0_i32, %arg1 : i32, i32
  }
  func.func @transform_4(%arg0: i32, %arg1: i32) -> (i32, i32) {
    %c0_i32 = arith.constant 0 : i32
    return %arg1, %arg0 : i32, i32
  }
  func.func @transform_5(%arg0: i32, %arg1: i32) -> (i32, i32) {
    %c0_i32 = arith.constant 0 : i32
    %c0_i32_0 = arith.constant 0 : i32
    return %c0_i32, %arg0 : i32, i32
  }
}

</mosaic_0001>

<bundles_post_ra>
// kernel: mlp_forward.1
= control target key start
LH: loop header
LB: loop body
LE: loop exit
PB: predicated region body
PF: predicated region fallthrough
CT: control target
= control target key end

     0   :  { %10 = vsyncpa [#allocation4], 0  ;;  %s629_s0 = inlined_call_operand.hbm [shape: f32[8,128], index: 0, kind: input, shape index: {}]   ;;  %s630_s1 = inlined_call_operand.hbm [shape: f32[128,128], index: 1, kind: input, shape index: {}]   ;;  %s631_s2 = inlined_call_operand.hbm [shape: f32[1,128], index: 2, kind: input, shape index: {}]   ;;  %s632_s3 = inlined_call_operand.hbm [shape: f32[1,128], index: 3, kind: input, shape index: {}]   ;;  %s633_s4 = inlined_call_operand.hbm [shape: f32[128,128], index: 4, kind: input, shape index: {}]   ;;  %s634_s5 = inlined_call_operand.hbm [shape: f32[8,128], index: 5, kind: output, shape index: {}]  }
   0x1   :  { %11 = vsyncpa [#allocation7], 0 }
   0x2   :  { %12 = vsyncpa [#allocation10], 0 }
   0x3   :  { %13 = vsyncpa [#allocation5], 0  ;;  %s493_s18 = smov [#allocation6]   ;;  %s353_s22 = scalar_lea.hbm %s630_s1, 2048 }
   0x4   :  { %s29_s19 = sshll.u32 %s493_s18, 4  ;;  %p354_p0 = scmp.ne.s32.totalorder %s630_s1, %s353_s22  ;;  %s30_s19 = int_to_ptr.vmem [resolvable:$true] %s29_s19 }
   0x5   :  { %p357_p1 = scmp.lt.u32.totalorder %s353_s22, %s630_s1 }
   0x7   :  { %p359_p2 = pnand %p357_p1, %p354_p0 }
   0x9   :  { %362 = shalt.err (!%p359_p2)
}
   0xa   :  { %s363_s27 = scalar_lea.vmem %s30_s19, 2048  ;;  %p368_p4 = scmp.lt.s32.totalorder %s30_s19, %s30_s19 }
   0xb   :  { %p364_p3 = scmp.ne.s32.totalorder %s30_s19, %s363_s27  ;;  %p369_p5 = scmp.lt.s32.totalorder %s363_s27, %s363_s27 }
   0xd   :  { %p370_p6 = por %p369_p5, %p368_p4 }
   0xf   :  { %p371_p7 = pnand %p370_p6, %p364_p3 }
  0x11   :  { %374 = shalt.err (!%p371_p7)
}
  0x12   :  { %s494_s28 = smov 128   ;;  %s495_s29 = smov 8  }
  0x13   :  { %35 = dma.hbm_to_vmem [thread:$0]  %s630_s1, 2048, %s30_s19, [#allocation7], %s494_s28, %s494_s28, %s495_s29  }
  0x14   :  { %s496_s7 = smov [#allocation9]   ;;  %s497_s9 = smov [#allocation3]  }
  0x15   :  { %s52_s8 = sshll.u32 %s496_s7, 4  ;;  %s20_s10 = sshll.u32 %s497_s9, 4  ;;  %s53_s8 = int_to_ptr.vmem [resolvable:$true] %s52_s8  ;;  %s21_s10 = int_to_ptr.vmem [resolvable:$true] %s20_s10 }
  0x16   :  { %s375_s13 = scalar_lea.hbm %s632_s3, 16 }
  0x17   :  { %p376_p8 = scmp.ne.s32.totalorder %s632_s3, %s375_s13  ;;  %p379_p9 = scmp.lt.u32.totalorder %s375_s13, %s632_s3 }
  0x19   :  { %p381_p10 = pnand %p379_p9, %p376_p8 }
  0x1b   :  { %384 = shalt.err (!%p381_p10)
}
  0x1c   :  { %s385_s1 = scalar_lea.vmem %s53_s8, 16  ;;  %s389_s18 = scalar_lea.vmem %s53_s8, 32 }
  0x1d   :  { %p386_p11 = scmp.ne.s32.totalorder %s53_s8, %s385_s1  ;;  %p390_p12 = scmp.lt.s32.totalorder %s53_s8, %s53_s8 }
  0x1e   :  { %p391_p13 = scmp.lt.s32.totalorder %s389_s18, %s385_s1 }
  0x20   :  { %p392_p0 = por %p391_p13, %p390_p12 }
  0x22   :  { %p393_p1 = pnand %p392_p0, %p386_p11 }
  0x24   :  { %396 = shalt.err (!%p393_p1)
}
  0x25   :  { %55 = dma.hbm_to_vmem [thread:$0]  %s632_s3, 16, %s53_s8, [#allocation10]  }
  0x26   :  { %s397_s23 = scalar_lea.hbm %s629_s0, 128 }
  0x27   :  { %p398_p2 = scmp.ne.s32.totalorder %s629_s0, %s397_s23  ;;  %p401_p3 = scmp.lt.u32.totalorder %s397_s23, %s629_s0 }
  0x29   :  { %p403_p4 = pnand %p401_p3, %p398_p2 }
  0x2b   :  { %406 = shalt.err (!%p403_p4)
}
  0x2c   :  { %s407_s30 = scalar_lea.vmem %s21_s10, 128  ;;  %p412_p6 = scmp.lt.s32.totalorder %s21_s10, %s21_s10 }
  0x2d   :  { %p408_p5 = scmp.ne.s32.totalorder %s21_s10, %s407_s30  ;;  %p413_p7 = scmp.lt.s32.totalorder %s407_s30, %s407_s30 }
  0x2f   :  { %p414_p8 = por %p413_p7, %p412_p6 }
  0x31   :  { %p415_p9 = pnand %p414_p8, %p408_p5 }
  0x33   :  { %418 = shalt.err (!%p415_p9)
}
  0x34   :  { %23 = dma.hbm_to_vmem [thread:$0]  %s629_s0, 128, %s21_s10, [#allocation4]  }
  0x35   :  { %s498_s7 = smov [#allocation8]   ;;  %s499_s9 = smov [#allocation11]  }
  0x36   :  { %s42_s8 = sshll.u32 %s498_s7, 4  ;;  %s61_s11 = sshll.u32 %s499_s9, 4  ;;  %s43_s8 = int_to_ptr.vmem [resolvable:$true] %s42_s8  ;;  %s62_s11 = int_to_ptr.vmem [resolvable:$true] %s61_s11 }
  0x37   :  { %s419_s14 = scalar_lea.hbm %s631_s2, 16 }
  0x38   :  { %p420_p10 = scmp.ne.s32.totalorder %s631_s2, %s419_s14  ;;  %p423_p11 = scmp.lt.u32.totalorder %s419_s14, %s631_s2 }
  0x3a   :  { %p425_p12 = pnand %p423_p11, %p420_p10 }
  0x3c   :  { %428 = shalt.err (!%p425_p12)
}
  0x3d   :  { %s429_s0 = scalar_lea.vmem %s43_s8, 16  ;;  %s433_s10 = scalar_lea.vmem %s43_s8, 32 }
  0x3e   :  { %p430_p13 = scmp.ne.s32.totalorder %s43_s8, %s429_s0  ;;  %p434_p0 = scmp.lt.s32.totalorder %s43_s8, %s43_s8 }
  0x3f   :  { %p435_p1 = scmp.lt.s32.totalorder %s433_s10, %s429_s0 }
  0x41   :  { %p436_p2 = por %p435_p1, %p434_p0 }
  0x43   :  { %p437_p3 = pnand %p436_p2, %p430_p13 }
  0x45   :  { %440 = shalt.err (!%p437_p3)
}
  0x46   :  { %45 = dma.hbm_to_vmem [thread:$0]  %s631_s2, 16, %s43_s8, [#allocation7]  }
  0x47   :  { %s441_s22 = scalar_lea.hbm %s633_s4, 2048 }
  0x48   :  { %p442_p4 = scmp.ne.s32.totalorder %s633_s4, %s441_s22  ;;  %p445_p5 = scmp.lt.u32.totalorder %s441_s22, %s633_s4 }
  0x4a   :  { %p447_p6 = pnand %p445_p5, %p442_p4 }
  0x4c   :  { %450 = shalt.err (!%p447_p6)
}
  0x4d   :  { %s451_s27 = scalar_lea.vmem %s62_s11, 2048  ;;  %p456_p8 = scmp.lt.s32.totalorder %s62_s11, %s62_s11 }
  0x4e   :  { %p452_p7 = scmp.ne.s32.totalorder %s62_s11, %s451_s27  ;;  %p457_p9 = scmp.lt.s32.totalorder %s451_s27, %s451_s27 }
  0x50   :  { %p458_p10 = por %p457_p9, %p456_p8 }
  0x52   :  { %p459_p11 = pnand %p458_p10, %p452_p7 }
  0x54   :  { %462 = shalt.err (!%p459_p11)
}
  0x55   :  { %67 = dma.hbm_to_vmem [thread:$0]  %s633_s4, 2048, %s62_s11, [#allocation10], %s494_s28, %s494_s28, %s495_s29  }
  0x56   :  { %485 = dma.done.wait [#allocation4], 128  }
  0x57   :  { %486 = vsyncadd [#allocation4], 4294967168 }
  0x58   :  { %487 = dma.done.wait [#allocation7], 2064  }
  0x59   :  { %488 = vsyncadd [#allocation7], 4294965232 }
  0x5a   :  { %489 = dma.done.wait [#allocation10], 2064  }
  0x5b   :  { %490 = vsyncadd [#allocation10], 4294965232  ;;  %v500_v0 = vmov 0.0   ;;  %vm501_vm0 = vmmov 0   ;;  %v91_v1 = vld [vmem:[#allocation6] sm:$0xff]  ;;  %v92_v2 = vld [vmem:[#allocation6 + $0x8] sm:$0xff] }
  0x5c   :  { %301 = vmatprep.subr.bf16.mxu0 %v500_v0  ;;  %317 = vmatprep.mubr.msk.bf16.mxu0 %vm501_vm0, %v500_v0  ;;  %v93_v3 = vld [vmem:[#allocation6 + $0x10] sm:$0xff]  ;;  %v107_v4 = vpack.c.bf16 %v92_v2, %v91_v1  ;;  %v94_v5 = vld [vmem:[#allocation6 + $0x18] sm:$0xff]  ;;  %v95_v7 = vld [vmem:[#allocation6 + $0x20] sm:$0xff]  ;;  %s502_s4 = smov [#allocation12]  }
  0x5d   :  { %321 = vmatprep.subr.bf16.mxu1 %v500_v0  ;;  %337 = vmatprep.mubr.msk.bf16.mxu1 %vm501_vm0, %v500_v0  ;;  %v108_v6 = vpack.c.bf16 %v94_v5, %v93_v3  ;;  %v96_v8 = vld [vmem:[#allocation6 + $0x28] sm:$0xff]  ;;  %v97_v10 = vld [vmem:[#allocation6 + $0x30] sm:$0xff]  ;;  %v98_v11 = vld [vmem:[#allocation6 + $0x38] sm:$0xff]  ;;  %s270_s28 = sshll.u32 %s502_s4, 4  ;;  %s271_s28 = int_to_ptr.vmem [resolvable:$true] %s270_s28 }
  0x5e   :  { %302 = vmatpush3.bf16.msra.mxu0 %v107_v4  ;;  %v109_v9 = vpack.c.bf16 %v96_v8, %v95_v7  ;;  %v110_v12 = vpack.c.bf16 %v98_v11, %v97_v10  ;;  %v99_v13 = vld [vmem:[#allocation6 + $0x40] sm:$0xff]  ;;  %v100_v14 = vld [vmem:[#allocation6 + $0x48] sm:$0xff]  ;;  %v101_v16 = vld [vmem:[#allocation6 + $0x50] sm:$0xff]  ;;  %s463_s29 = scalar_lea.vmem %s271_s28, 128  ;;  %p468_p13 = scmp.lt.s32.totalorder %s271_s28, %s271_s28 }
  0x5f   :  { %303 = vmatprep.subr.bf16.mxu0 %v500_v0  ;;  %v111_v15 = vpack.c.bf16 %v100_v14, %v99_v13  ;;  %v102_v17 = vld [vmem:[#allocation6 + $0x58] sm:$0xff]  ;;  %v103_v19 = vld [vmem:[#allocation6 + $0x60] sm:$0xff]  ;;  %v104_v20 = vld [vmem:[#allocation6 + $0x68] sm:$0xff]  ;;  %p464_p12 = scmp.ne.s32.totalorder %s271_s28, %s463_s29  ;;  %p469_p0 = scmp.lt.s32.totalorder %s463_s29, %s463_s29 }
  0x60   :  { %v112_v18 = vpack.c.bf16 %v102_v17, %v101_v16  ;;  %v113_v21 = vpack.c.bf16 %v104_v20, %v103_v19  ;;  %v105_v22 = vld [vmem:[#allocation6 + $0x70] sm:$0xff]  ;;  %v106_v23 = vld [vmem:[#allocation6 + $0x78] sm:$0xff]  ;;  %v193_v27 = vld [vmem:[#allocation11] sm:$0xff] }
  0x61   :  { %v114_v24 = vpack.c.bf16 %v106_v23, %v105_v22  ;;  %v89_v25 = vld [vmem:[#allocation3] sm:$0xff]  ;;  %v194_v28 = vld [vmem:[#allocation11 + $0x8] sm:$0xff]  ;;  %v197_v33 = vld [vmem:[#allocation11 + $0x20] sm:$0xff]  ;;  %p470_p1 = por %p469_p0, %p468_p13 }
  0x62   :  { %304 = vmatpush3.bf16.msra.mxu0 %v108_v6  ;;  %v90_v26 = vpack.c.bf16 %v89_v25, %v89_v25  ;;  %v209_v29 = vpack.c.bf16 %v194_v28, %v193_v27  ;;  %v195_v30 = vld [vmem:[#allocation11 + $0x10] sm:$0xff]  ;;  %v196_v31 = vld [vmem:[#allocation11 + $0x18] sm:$0xff]  ;;  %v198_v34 = vld [vmem:[#allocation11 + $0x28] sm:$0xff] }
  0x63   :  { %305 = vmatprep.subr.bf16.mxu0 %v500_v0  ;;  %v210_v32 = vpack.c.bf16 %v196_v31, %v195_v30  ;;  %v211_v35 = vpack.c.bf16 %v198_v34, %v197_v33  ;;  %v199_v36 = vld [vmem:[#allocation11 + $0x30] sm:$0xff]  ;;  %v200_v37 = vld [vmem:[#allocation11 + $0x38] sm:$0xff]  ;;  %v201_v39 = vld [vmem:[#allocation11 + $0x40] sm:$0xff]  ;;  %p471_p2 = pnand %p470_p1, %p464_p12 }
  0x64   :  { %322 = vmatpush3.bf16.msra.mxu1 %v209_v29  ;;  %v212_v38 = vpack.c.bf16 %v200_v37, %v199_v36  ;;  %v202_v40 = vld [vmem:[#allocation11 + $0x48] sm:$0xff]  ;;  %v203_v42 = vld [vmem:[#allocation11 + $0x50] sm:$0xff]  ;;  %v204_v43 = vld [vmem:[#allocation11 + $0x58] sm:$0xff] }
  0x65   :  { %323 = vmatprep.subr.bf16.mxu1 %v500_v0  ;;  %v213_v41 = vpack.c.bf16 %v202_v40, %v201_v39  ;;  %v214_v44 = vpack.c.bf16 %v204_v43, %v203_v42  ;;  %v205_v45 = vld [vmem:[#allocation11 + $0x60] sm:$0xff]  ;;  %v206_v46 = vld [vmem:[#allocation11 + $0x68] sm:$0xff]  ;;  %v207_v47 = vld [vmem:[#allocation11 + $0x70] sm:$0xff] }
  0x66   :  { %306 = vmatpush3.bf16.msra.mxu0 %v109_v9  ;;  %v215_v48 = vpack.c.bf16 %v206_v46, %v205_v45  ;;  %v208_v49 = vld [vmem:[#allocation11 + $0x78] sm:$0xff] }
  0x67   :  { %307 = vmatprep.subr.bf16.mxu0 %v500_v0  ;;  %v216_v50 = vpack.c.bf16 %v208_v49, %v207_v47  ;;  %v281_v9 = vld [vmem:[#allocation8] ss:$0 sm:$0xff]  ;;  %v282_v11 = vld [vmem:[#allocation9] ss:$0 sm:$0xff] }
  0x68   :  { %324 = vmatpush3.bf16.msra.mxu1 %v210_v32 }
  0x69   :  { %325 = vmatprep.subr.bf16.mxu1 %v500_v0 }
  0x6a   :  { %308 = vmatpush3.bf16.msra.mxu0 %v110_v12 }
  0x6b   :  { %309 = vmatprep.subr.bf16.mxu0 %v500_v0 }
  0x6c   :  { %326 = vmatpush3.bf16.msra.mxu1 %v211_v35 }
  0x6d   :  { %327 = vmatprep.subr.bf16.mxu1 %v500_v0 }
  0x6e   :  { %310 = vmatpush3.bf16.msra.mxu0 %v111_v15 }
  0x6f   :  { %311 = vmatprep.subr.bf16.mxu0 %v500_v0 }
  0x70   :  { %328 = vmatpush3.bf16.msra.mxu1 %v212_v38 }
  0x71   :  { %329 = vmatprep.subr.bf16.mxu1 %v500_v0 }
  0x72   :  { %312 = vmatpush3.bf16.msra.mxu0 %v112_v18 }
  0x73   :  { %313 = vmatprep.subr.bf16.mxu0 %v500_v0 }
  0x74   :  { %330 = vmatpush3.bf16.msra.mxu1 %v213_v41 }
  0x75   :  { %331 = vmatprep.subr.bf16.mxu1 %v500_v0 }
  0x76   :  { %314 = vmatpush3.bf16.msra.mxu0 %v113_v21 }
  0x77   :  { %315 = vmatprep.subr.bf16.mxu0 %v500_v0 }
  0x78   :  { %332 = vmatpush3.bf16.msra.mxu1 %v214_v44 }
  0x79   :  { %333 = vmatprep.subr.bf16.mxu1 %v500_v0 }
  0x7a   :  { %316 = vmatpush3.bf16.msra.mxu0 %v114_v24 }
  0x7c   :  { %334 = vmatpush3.bf16.msra.mxu1 %v215_v48 }
  0x7d   :  { %318 = vmatmul.mubr.bf16.vlgmr.msra.gmra.mrb[0].mxu0 %v90_v26  ;;  %335 = vmatprep.subr.bf16.mxu1 %v500_v0 }
  0x80   :  { %336 = vmatpush3.bf16.msra.mxu1 %v216_v50 }
 0x150   :  { %v149_v51 = vpop.f32.mrb[0].mxu0 }
 0x151   :  { %v155_v52 = vrot.slane %v149_v51, 4  ;;  %v319_v53 = vpop.f32.mrb[1].mxu0 }
 0x152   :  { %v152_v54 = vpop.f32.mrb[2].mxu0 }
 0x153   :  { %v156_v55 = vadd.f32 %v155_v52, %v149_v51  ;;  %v320_v56 = vpop.f32.mrb[3].mxu0 }
 0x155   :  { %v157_v57 = vrot.slane %v156_v55, 2 }
 0x157   :  { %v158_v58 = vadd.f32 %v157_v57, %v156_v55 }
 0x159   :  { %v159_v59 = vrot.slane %v158_v58, 1 }
 0x15b   :  { %v160_v60 = vadd.f32 %v159_v59, %v158_v58 }
 0x15d   :  { %v161_v61 = vmul.f32 0.125, %v160_v60 }
 0x15f   :  { %v162_v62 = vsub.f32 %v149_v51, %v161_v61 }
 0x161   :  { %v163_v63 = vmul.f32 %v162_v62, %v162_v62 }
 0x163   :  { %v164_v1 = vrot.slane %v163_v63, 4 }
 0x165   :  { %v165_v2 = vadd.f32 %v164_v1, %v163_v63 }
 0x167   :  { %v166_v3 = vrot.slane %v165_v2, 2 }
 0x169   :  { %v167_v4 = vadd.f32 %v166_v3, %v165_v2 }
 0x16b   :  { %v168_v5 = vrot.slane %v167_v4, 1 }
 0x16d   :  { %v169_v0 = vadd.f32 %v168_v5, %v167_v4 }
 0x16f   :  { %v170_v6 = vmul.f32 0.125, %v169_v0 }
 0x171   :  { %v171_v7 = vadd.f32 1e-05, %v170_v6 }
 0x173   :  { %351 = vrsqrt.f32 %v171_v7 }
 0x17d   :  { %v352_v8 = vpop.eup %351 }
 0x17e   :  { %v173_v10 = vmul.f32 %v352_v8, %v162_v62 }
 0x180   :  { %v181_v12 = vmul.f32 %v281_v9, %v173_v10 }
 0x182   :  { %v189_v13 = vadd.f32 %v282_v11, %v181_v12 }
 0x184   :  { %v190_v14 = vmax.f32 %v189_v13, 0.0 }
 0x186   :  { %v192_v15 = vpack.c.bf16 %v190_v14, %v190_v14 }
 0x188   :  { %338 = vmatmul.mubr.bf16.vlgmr.msra.gmra.mrb[0].mxu1 %v192_v15 }
 0x25b   :  { %v251_v16 = vpop.f32.mrb[0].mxu1 }
 0x25c   :  { %263 = vst [vmem:[#allocation12] sm:$0xff] %v251_v16  ;;  %v339_v17 = vpop.f32.mrb[1].mxu1 }
 0x25d   :  { %v254_v18 = vpop.f32.mrb[2].mxu1 }
 0x25e   :  { %474 = shalt.err (!%p471_p2)
}
 0x25f   :  { %s475_s7 = scalar_lea.hbm %s634_s5, 128 }
 0x260   :  { %p476_p3 = scmp.ne.s32.totalorder %s634_s5, %s475_s7  ;;  %p479_p4 = scmp.lt.u32.totalorder %s475_s7, %s634_s5 }
 0x262   :  { %p481_p5 = pnand %p479_p4, %p476_p3 }
 0x264   :  { %484 = shalt.err (!%p481_p5)
}
 0x265   :  { %273 = dma.vmem_to_hbm [thread:$0]  %s271_s28, 128, %s634_s5, [#allocation5]   ;;  %v340_v19 = vpop.f32.mrb[3].mxu1 }
 0x266   :  { %491 = dma.done.wait [#allocation5], 128  }
 0x267   :  { %492 = vsyncadd [#allocation5], 4294967168 }
 0x268   :  { %277 = vsyncpa [#allocation4], 1 }
 0x269   :  { %278 = vsyncpa [#allocation7], 1 }
 0x26a   :  { %279 = vsyncpa [#allocation10], 1 }
 0x26b   :  { %280 = vsyncpa [#allocation5], 1 }

</bundles_post_ra>
